<compile_context>
chip_gen: v6e
topology: v6e:2x2x1
jax: 0.10.0
libtpu: 0.0.40
codegen_flags: <defaults>
</compile_context>

<pallas_src>
import functools

import jax
import jax.numpy as jnp
from jax.experimental import pallas as pl
from jax.experimental.pallas import tpu as pltpu


# ---------------------------------------------------------------------------
# helpers
# ---------------------------------------------------------------------------

def _round_up(n, m):
    return ((n + m - 1) // m) * m


def _largest_divisor_leq(n, cap):
    cap = max(1, min(n, cap))
    for d in range(cap, 0, -1):
        if n % d == 0:
            return d
    return 1


def _chip_budgets():
    """Generation-aware VMEM budgets.

    Returns (block_budget_bytes, vmem_limit_cap_bytes, multi_tensorcore)."""
    cap = 64 << 20
    try:
        info = pltpu.get_tpu_info()
        cap = int(getattr(info, "vmem_capacity_bytes", cap) or cap)
    except Exception:
        pass
    if cap >= (96 << 20):
        # v5e / v6e: 128 MiB VMEM, single TensorCore per chip.
        return 56 << 20, 96 << 20, False
    # v7x-like: 64 MiB VMEM per TensorCore, 2 TensorCores per chip (or unknown).
    return 24 << 20, 48 << 20, True


def _vmem_limit(active_bytes, cap_bytes):
    return int(min(max(active_bytes + (8 << 20), 32 << 20), cap_bytes))


# ---------------------------------------------------------------------------
# kernels
# ---------------------------------------------------------------------------

def _se_fused_kernel(x_ref, w1_ref, w2_ref, o_ref, *, inv_hw):
    # x_ref: (TB, C, HW) native dtype (full HW extent, no host pad); weights f32.
    x = x_ref[...]
    # Squeeze: pool over the lane axis, accumulating in f32 (no whole-block cast).
    y = jnp.sum(x, axis=-1, dtype=jnp.float32) * inv_hw                    # (TB, C)
    # Excitation MLP (tiny; MXU utilisation irrelevant).
    h = jnp.maximum(
        jnp.dot(y, w1_ref[...], preferred_element_type=jnp.float32), 0.0)
    g = jax.nn.sigmoid(
        jnp.dot(h, w2_ref[...], preferred_element_type=jnp.float32))       # (TB, C)
    # Scale: broadcast per-channel gate along lanes, store in x dtype.
    o_ref[...] = x * g[:, :, None].astype(o_ref.dtype)


def _pool_kernel(x_ref, o_ref, *, hw, thw):
    # grid = (B, n_c, n_hw); HW axis is the reduction ("arbitrary") axis.
    # Output block (1, TC, 1) is the resident f32 accumulator (keepdims layout:
    # no per-step cross-lane relayout).
    h_idx = pl.program_id(2)

    @pl.when(h_idx == 0)
    def _():
        o_ref[...] = jnp.zeros_like(o_ref)

    x = x_ref[...]
    if hw % thw != 0:
        # Mask the ragged tail of the last HW tile (OOB lanes hold garbage).
        pos = h_idx * thw + jax.lax.broadcasted_iota(jnp.int32, x.shape, 2)
        x = jnp.where(pos < hw, x, jnp.zeros_like(x))
    o_ref[...] += jnp.sum(x, axis=-1, keepdims=True, dtype=jnp.float32)


def _scale_kernel(x_ref, g_ref, o_ref):
    # Pure HBM streaming: read tile, multiply by resident (1, C, 1) gate, store.
    # Ragged last HW tile: OOB input is garbage but OOB output writes are dropped.
    o_ref[...] = x_ref[...] * g_ref[...].astype(o_ref.dtype)


# ---------------------------------------------------------------------------
# wrapper
# ---------------------------------------------------------------------------

def se_block(x, w1, w2, *, two_pass=None, block_hw=None):
    """SEBlock forward.

    x : (B, C, H, W)
    w1: (C//r, C)   PyTorch nn.Linear weight layout (out, in), no bias
    w2: (C, C//r)
    """
    B, C, H, W = x.shape
    HW = H * W
    Cr = w1.shape[0]
    itemsize = jnp.dtype(x.dtype).itemsize
    inv_hw = 1.0 / float(HW)

    budget, limit_cap, multi_tc = _chip_budgets()

    # Free reshape (contiguous); no host-side pad / slice round-trips.
    x_flat = x.reshape(B, C, HW)
    w1_t = jnp.asarray(w1, jnp.float32).T        # (C, Cr)
    w2_t = jnp.asarray(w2, jnp.float32).T        # (Cr, C)
    weight_bytes = (w1_t.size + w2_t.size) * 4

    # VMEM footprint estimates use the padded on-chip layout (lanes->128, sublanes).
    hw_lane = _round_up(HW, 128)
    sub = max(8, 32 // max(1, itemsize))
    c_pad = _round_up(C, sub)
    per_batch_vmem = c_pad * hw_lane * itemsize

    # Largest TB whose double-buffered in+out blocks plus double-buffered
    # weights fit the block budget.
    max_tb_fit = (budget - 2 * weight_bytes) // max(1, 4 * per_batch_vmem)

    if two_pass is None:
        # Fall back to two-pass when the fused block cannot fit, or at batch 1
        # on multi-TensorCore chips so the streaming phase gets a parallel axis.
        two_pass = (max_tb_fit < 1) or (multi_tc and B == 1 and HW >= 1024)

    if not two_pass:
        # ---------------- fused single-pass path (x read once) ----------------
        # Don't maximize TB: target >= ~8 grid steps so the pipeline hides the
        # first input DMA and last output writeback.
        cap_tb = max(1, B // 8) if B >= 8 else 1
        TB = _largest_divisor_leq(B, min(max(1, max_tb_fit), cap_tb))
        active = 4 * TB * per_batch_vmem + 2 * weight_bytes

        out_flat = pl.pallas_call(
            functools.partial(_se_fused_kernel, inv_hw=inv_hw),
            out_shape=jax.ShapeDtypeStruct((B, C, HW), x.dtype),
            grid_spec=pltpu.PrefetchScalarGridSpec(
                num_scalar_prefetch=0,
                grid=(B // TB,),
                in_specs=[
                    pl.BlockSpec((TB, C, HW), lambda b: (b, 0, 0)),
                    pl.BlockSpec((C, Cr), lambda b: (0, 0)),
                    pl.BlockSpec((Cr, C), lambda b: (0, 0)),
                ],
                out_specs=pl.BlockSpec((TB, C, HW), lambda b: (b, 0, 0)),
            ),
            compiler_params=pltpu.CompilerParams(
                dimension_semantics=("parallel",),
                vmem_limit_bytes=_vmem_limit(active, limit_cap),
            ),
        )(x_flat, w1_t, w2_t)
        return out_flat.reshape(B, C, H, W)

    # -------- two-pass path: tiled pool -> tiny XLA MLP -> tiled scale --------
    n128 = pl.cdiv(HW, 128)
    if block_hw is not None:
        assert block_hw % 128 == 0
        t = block_hw // 128
    else:
        # Largest multiple-of-128 tile fitting the budget; prefer >= 512 lanes,
        # but keep >= 2 HW steps (pipelining / megacore) when HW is large.
        max_t_fit = max(1, budget // max(1, 4 * c_pad * 128 * itemsize))
        t = min(n128, max_t_fit)
        if t >= n128 and n128 >= 8:
            t = (n128 + 1) // 2
    if t >= n128:
        THW, n_hw = HW, 1                 # single full-extent tile (no ragged tail)
    else:
        THW = 128 * t
        n_hw = pl.cdiv(HW, THW)

    # Channel tiling for the pool: gives a parallel multi-step axis at B == 1.
    TC = C
    if B == 1 and C >= 16 and C % 8 == 0:
        for d in range(C // 2, 7, -1):
            if C % d == 0 and d % 8 == 0:
                TC = d
                break
    n_c = C // TC

    # Phase 1: per-channel spatial sum (weights kept out of this pipeline).
    pool_active = 2 * _round_up(TC, sub) * _round_up(THW, 128) * itemsize + (1 << 20)
    pooled = pl.pallas_call(
        functools.partial(_pool_kernel, hw=HW, thw=THW),
        out_shape=jax.ShapeDtypeStruct((B, C, 1), jnp.float32),
        grid_spec=pltpu.PrefetchScalarGridSpec(
            num_scalar_prefetch=0,
            grid=(B, n_c, n_hw),
            in_specs=[pl.BlockSpec((1, TC, THW), lambda b, c, h: (b, c, h))],
            out_specs=pl.BlockSpec((1, TC, 1), lambda b, c, h: (b, c, 0)),
        ),
        compiler_params=pltpu.CompilerParams(
            dimension_semantics=("parallel", "parallel", "arbitrary"),
            vmem_limit_bytes=_vmem_limit(pool_active, limit_cap),
        ),
    )(x_flat)

    # Tiny excitation MLP in plain XLA: O(B*C*Cr), negligible wherever it runs.
    y = pooled[:, :, 0] * inv_hw                                  # (B, C) f32
    h1 = jnp.maximum(y @ w1_t, 0.0)
    gate = jax.nn.sigmoid(h1 @ w2_t)[:, :, None]                  # (B, C, 1) f32

    # Phase 2: fully parallel streaming scale.
    scale_active = 4 * c_pad * _round_up(THW, 128) * itemsize + 2 * c_pad * 128 * 4
    out_flat = pl.pallas_call(
        _scale_kernel,
        out_shape=jax.ShapeDtypeStruct((B, C, HW), x.dtype),
        grid_spec=pltpu.PrefetchScalarGridSpec(
            num_scalar_prefetch=0,
            grid=(B, n_hw),
            in_specs=[
                pl.BlockSpec((1, C, THW), lambda b, h: (b, 0, h)),
                pl.BlockSpec((1, C, 1), lambda b, h: (b, 0, 0)),
            ],
            out_specs=pl.BlockSpec((1, C, THW), lambda b, h: (b, 0, h)),
        ),
        compiler_params=pltpu.CompilerParams(
            dimension_semantics=("parallel", "parallel"),
            vmem_limit_bytes=_vmem_limit(scale_active, limit_cap),
        ),
    )(x_flat, gate)
    return out_flat.reshape(B, C, H, W)


# ---------------------------------------------------------------------------
# reference + test
# ---------------------------------------------------------------------------

def _reference(x, w1, w2):
    y = jnp.mean(x, axis=(2, 3))                 # (B, C)
    y = jnp.maximum(y @ w1.T, 0.0)               # (B, C//r)
    y = jax.nn.sigmoid(y @ w2.T)                 # (B, C)
    return x * y[:, :, None, None]


if __name__ == "__main__":
    # Test 1: fused single-pass path with a ragged HW (7*7 = 49, not % 128).
    B, C, H, W = 2, 64, 7, 7
    Cr = C // 16
    kx, k1, k2 = jax.random.split(jax.random.PRNGKey(0), 3)
    x = jax.random.normal(kx, (B, C, H, W), dtype=jnp.float32)
    w1 = jax.random.normal(k1, (Cr, C), dtype=jnp.float32) * 0.1     # (C//r, C)
    w2 = jax.random.normal(k2, (C, Cr), dtype=jnp.float32) * 0.1     # (C, C//r)
    out = jax.block_until_ready(se_block(x, w1, w2))
    ref = _reference(x, w1, w2)
    assert out.shape == (B, C, H, W)
    assert jnp.allclose(out, ref, atol=1e-5, rtol=1e-5), "fused path mismatch"

    # Test 2: forced two-pass path with a ragged last HW tile (20*20 = 3*128 + 16).
    B2, C2, H2, W2 = 2, 32, 20, 20
    Cr2 = C2 // 8
    kx2, k12, k22 = jax.random.split(jax.random.PRNGKey(1), 3)
    x2 = jax.random.normal(kx2, (B2, C2, H2, W2), dtype=jnp.float32)
    w12 = jax.random.normal(k12, (Cr2, C2), dtype=jnp.float32) * 0.1
    w22 = jax.random.normal(k22, (C2, Cr2), dtype=jnp.float32) * 0.1
    out2 = jax.block_until_ready(se_block(x2, w12, w22, two_pass=True, block_hw=128))
    ref2 = _reference(x2, w12, w22)
    assert jnp.allclose(out2, ref2, atol=1e-5, rtol=1e-5), "two-pass path mismatch"

    # Test 3: batch-1 two-pass with channel-tiled pool and a 2-step HW axis.
    B3, C3, H3, W3 = 1, 32, 32, 32
    kx3, k13, k23 = jax.random.split(jax.random.PRNGKey(2), 3)
    x3 = jax.random.normal(kx3, (B3, C3, H3, W3), dtype=jnp.float32)
    w13 = jax.random.normal(k13, (C3 // 16, C3), dtype=jnp.float32) * 0.1
    w23 = jax.random.normal(k23, (C3, C3 // 16), dtype=jnp.float32) * 0.1
    out3 = jax.block_until_ready(se_block(x3, w13, w23, two_pass=True))
    ref3 = _reference(x3, w13, w23)
    assert jnp.allclose(out3, ref3, atol=1e-5, rtol=1e-5), "batch-1 two-pass mismatch"

    print("KERNEL_OK")
</pallas_src>

<mosaic_0001>
module attributes {stable_mosaic.version = 11 : i64} {
  func.func @_se_fused_kernel(%arg0: i32, %arg1: memref<1x64x49xf32, #tpu.memory_space<vmem>>, %arg2: memref<64x4xf32, #tpu.memory_space<vmem>>, %arg3: memref<4x64xf32, #tpu.memory_space<vmem>>, %arg4: memref<1x64x49xf32, #tpu.memory_space<vmem>>) attributes {dimension_semantics = [#tpu.dimension_semantics<parallel>], iteration_bounds = array<i64: 2>, scalar_prefetch = 0 : i64, scratch_operands = 0 : i64, tpu.core_type = #tpu.core_type<tc>, window_params = [{transform_indices = @transform_0, window_bounds = array<i64: 1, 64, 49>}, {pipeline_mode = #tpu.pipeline_mode<synchronous>, transform_indices = @transform_1, window_bounds = array<i64: 64, 4>}, {pipeline_mode = #tpu.pipeline_mode<synchronous>, transform_indices = @transform_2, window_bounds = array<i64: 4, 64>}, {transform_indices = @transform_3, window_bounds = array<i64: 1, 64, 49>}]} {
    %c0 = arith.constant 0 : index
    %c0_0 = arith.constant 0 : index
    %c0_1 = arith.constant 0 : index
    %0 = vector.load %arg1[%c0, %c0_0, %c0_1] : memref<1x64x49xf32, #tpu.memory_space<vmem>>, vector<1x64x49xf32>
    %cst = arith.constant dense<0.000000e+00> : vector<1x64xf32>
    %1 = vector.multi_reduction <add>, %0, %cst [2] : vector<1x64x49xf32> to vector<1x64xf32>
    %cst_2 = arith.constant 0.0204081628 : f32
    %2 = vector.broadcast %cst_2 : f32 to vector<1x64xf32>
    %3 = arith.mulf %1, %2 : vector<1x64xf32>
    %c0_3 = arith.constant 0 : index
    %c0_4 = arith.constant 0 : index
    %4 = vector.load %arg2[%c0_3, %c0_4] : memref<64x4xf32, #tpu.memory_space<vmem>>, vector<64x4xf32>
    %cst_5 = arith.constant dense<0.000000e+00> : vector<1x4xf32>
    %5 = tpu.matmul %3, %4, %cst_5 {dimension_numbers = #tpu.dot_dimension_numbers<[1], [0], [0], [1], [0, 0, 1, 1], [], []>} : vector<1x64xf32>, vector<64x4xf32>, vector<1x4xf32> -> vector<1x4xf32>
    %cst_6 = arith.constant 0.000000e+00 : f32
    %6 = vector.broadcast %cst_6 : f32 to vector<1x4xf32>
    %7 = arith.maximumf %5, %6 : vector<1x4xf32>
    %c0_7 = arith.constant 0 : index
    %c0_8 = arith.constant 0 : index
    %8 = vector.load %arg3[%c0_7, %c0_8] : memref<4x64xf32, #tpu.memory_space<vmem>>, vector<4x64xf32>
    %cst_9 = arith.constant dense<0.000000e+00> : vector<1x64xf32>
    %9 = tpu.matmul %7, %8, %cst_9 {dimension_numbers = #tpu.dot_dimension_numbers<[1], [0], [0], [1], [0, 0, 1, 1], [], []>} : vector<1x4xf32>, vector<4x64xf32>, vector<1x64xf32> -> vector<1x64xf32>
    %10 = arith.negf %9 : vector<1x64xf32>
    %11 = math.exp %10 : vector<1x64xf32>
    %cst_10 = arith.constant 1.000000e+00 : f32
    %12 = vector.broadcast %cst_10 : f32 to vector<1x64xf32>
    %13 = arith.addf %12, %11 : vector<1x64xf32>
    %14 = arith.divf %12, %13 : vector<1x64xf32>
    %15 = vector.shape_cast %14 : vector<1x64xf32> to vector<1x64x1xf32>
    %16 = vector.broadcast %15 : vector<1x64x1xf32> to vector<1x64x49xf32>
    %17 = arith.mulf %0, %16 : vector<1x64x49xf32>
    %c0_11 = arith.constant 0 : index
    %c0_12 = arith.constant 0 : index
    %c0_13 = arith.constant 0 : index
    %18 = vector.load %arg4[%c0_11, %c0_12, %c0_13] : memref<1x64x49xf32, #tpu.memory_space<vmem>>, vector<1x64x49xf32>
    tpu.vector_store %arg4[%c0_11, %c0_12, %c0_13], %17 {strides = array<i32>} : memref<1x64x49xf32, #tpu.memory_space<vmem>>, vector<1x64x49xf32>,
    return
  }
  func.func @transform_0(%arg0: i32) -> (i32, i32, i32) {
    %c0_i32 = arith.constant 0 : i32
    %c0_i32_0 = arith.constant 0 : i32
    %c0_i32_1 = arith.constant 0 : i32
    return %arg0, %c0_i32, %c0_i32_0 : i32, i32, i32
  }
  func.func @transform_1(%arg0: i32) -> (i32, i32) {
    %c0_i32 = arith.constant 0 : i32
    %c0_i32_0 = arith.constant 0 : i32
    %c0_i32_1 = arith.constant 0 : i32
    return %c0_i32, %c0_i32_0 : i32, i32
  }
  func.func @transform_2(%arg0: i32) -> (i32, i32) {
    %c0_i32 = arith.constant 0 : i32
    %c0_i32_0 = arith.constant 0 : i32
    %c0_i32_1 = arith.constant 0 : i32
    return %c0_i32, %c0_i32_0 : i32, i32
  }
  func.func @transform_3(%arg0: i32) -> (i32, i32, i32) {
    %c0_i32 = arith.constant 0 : i32
    %c0_i32_0 = arith.constant 0 : i32
    %c0_i32_1 = arith.constant 0 : i32
    return %arg0, %c0_i32, %c0_i32_0 : i32, i32, i32
  }
}

</mosaic_0001>

<bundles_post_ra>
// kernel: tpu_custom_call.1
= control target key start
LH: loop header
LB: loop body
LE: loop exit
PB: predicated region body
PF: predicated region fallthrough
CT: control target
= control target key end

     0   :  { %s644_s12 = smov 0   ;;  %s754_s0 = inlined_call_operand.vmem [shape: f32[2,64,49], index: 0, kind: input, shape index: {}]   ;;  %s755_s1 = inlined_call_operand.vmem [shape: f32[64,4], index: 1, kind: input, shape index: {}]   ;;  %s756_s2 = inlined_call_operand.vmem [shape: f32[4,64], index: 2, kind: input, shape index: {}]   ;;  %s757_s3 = inlined_call_operand.vmem [shape: f32[2,64,49], index: 3, kind: output, shape index: {}]  }
   0x1 LB: > { %s548_s13 = sadd.s32 4294967295, %s620_s12   ;;  %p552_p0 = scmp.ge.s32.totalorder %s620_s12, 1  ;;  %s620_s12 = sphi %s644_s12, %s13_s12  }
   0x2   : > { %p137_p1 = scmp.lt.s32.totalorder %s620_s12, 3 }
   0x4   : > { %p138_p2 = pnand %p552_p0, %p137_p1 }
   0x5   : > { %p161_p3 = scmp.lt.s32.totalorder (!%p138_p2), %s548_s13, 1 }
   0x6   : > { %141 = sbr.rel (%p138_p2) target bundleno = 728 (0x2d8), region = 32 }
   0xb   : > { %s759_s13 = smov (!%p161_p3, %s548_s13), 1  ;;  %vm179_vm0 = vcmask 400384   ;;  %v219_v16 = vld [vmem:[%s755_s1 + $0x38] sm:$0xff]  ;;  %v622_v17 = vmov 0.0   ;;  %v218_v18 = vld [vmem:[%s755_s1 + $0x30] sm:$0xff]  ;;  %v217_v19 = vld [vmem:[%s755_s1 + $0x28] sm:$0xff]  ;;  %v228_v25 = vlaneseq }
   0xc   : > { %s563_s14 = sshll.u32 %s759_s13, 6  ;;  %576 = vmatprep.subr.mxu0 %v622_v17  ;;  %595 = vmatprep.subr.mxu1 %v622_v17  ;;  %v216_v20 = vld [vmem:[%s755_s1 + $0x20] sm:$0xff]  ;;  %v215_v21 = vld [vmem:[%s755_s1 + $0x18] sm:$0xff]  ;;  %v214_v22 = vld [vmem:[%s755_s1 + $0x10] sm:$0xff]  ;;  %vm623_vm1 = vmmov 0   ;;  %vm239_vm2 = vcmask 130112  }
   0xd   : > { %s165_s17 = scalar_lea.vmem %s754_s0, %s563_s14  ;;  %577 = vmatpush3.msra.mxu0 %v219_v16  ;;  %v213_v23 = vld [vmem:[%s755_s1 + $0x8] sm:$0xff]  ;;  %v212_v24 = vld [vmem:[%s755_s1] sm:$0xff]  ;;  %592 = vmatprep.mubr.msk.f32.mxu0 %vm623_vm1, %v622_v17  ;;  %v229_v26 = vand.u32 127, %v228_v25  ;;  %v716_v27 = vshrl.u32 %v228_v25, 7  ;;  %vm246_vm3 = vcmask 195712   ;;  %vm253_vm4 = vcmask 261312   ;;  %s170_s11 = scalar_lea.vmem %s757_s3, %s563_s14 }
   0xe   : > { %v660_v0 = vld [vmem:[%s165_s17] sm:$0xff]  ;;  %v662_v1 = vld [vmem:[%s165_s17 + $0x10] sm:$0xff]  ;;  %v664_v2 = vld [vmem:[%s165_s17 + $0x8] sm:$0xff]  ;;  %578 = vmatprep.subr.mxu0 %v622_v17  ;;  %597 = vmatprep.mubr.msk.f32.mxu1 %vm623_vm1, %v622_v17  ;;  %vm260_vm5 = vcmask 326912   ;;  %vm267_vm6 = vcmask 392512   ;;  %vm274_vm7 = vcmask 458112  }
   0xf   : > { %v180_v3 = vsel %vm179_vm0, %v660_v0, 0.0  ;;  %v186_v4 = vsel %vm179_vm0, %v662_v1, 0.0  ;;  %v670_v5 = vld [vmem:[%s165_s17 + $0x18] sm:$0xff]  ;;  %v183_v6 = vsel %vm179_vm0, %v664_v2, 0.0  ;;  %v676_v8 = vld [vmem:[%s165_s17 + $0x20] sm:$0xff]  ;;  %v678_v9 = vld [vmem:[%s165_s17 + $0x28] sm:$0xff]  ;;  %579 = vmatpush3.msra.mxu0 %v218_v18  ;;  %v232_v34 = vsub.s32 %v229_v26, %v716_v27 }
  0x10   : > { %181 = vadd.xlane.f32.xlu0 %v180_v3  ;;  %187 = vadd.xlane.f32.xlu1 %v186_v4  ;;  %v189_v7 = vsel %vm179_vm0, %v670_v5, 0.0  ;;  %v192_v10 = vsel %vm179_vm0, %v676_v8, 0.0  ;;  %v195_v11 = vsel %vm179_vm0, %v678_v9, 0.0  ;;  %v684_v12 = vld [vmem:[%s165_s17 + $0x30] sm:$0xff]  ;;  %v686_v13 = vld [vmem:[%s165_s17 + $0x38] sm:$0xff]  ;;  %v234_v28 = vadd.s32 4294967288, %v229_v26 }
  0x11   : > { %v198_v14 = vsel %vm179_vm0, %v684_v12, 0.0  ;;  %v201_v15 = vsel %vm179_vm0, %v686_v13, 0.0  ;;  %580 = vmatprep.subr.mxu0 %v622_v17  ;;  %v248_v29 = vadd.s32 4294967272, %v229_v26  ;;  %v241_v31 = vadd.s32 4294967280, %v229_v26  ;;  %v357_v18 = vld [vmem:[%s756_s2] sm:$0xf] }
  0x12   : > { %581 = vmatpush3.msra.mxu0 %v217_v19  ;;  %v255_v33 = vadd.s32 4294967264, %v229_v26  ;;  %v237_v36 = vsub.s32 %v234_v28, %v716_v27  ;;  %v262_v42 = vadd.s32 4294967256, %v229_v26  ;;  %v269_v46 = vadd.s32 4294967248, %v229_v26 }
  0x13   : > { %582 = vmatprep.subr.mxu0 %v622_v17  ;;  %v251_v37 = vsub.s32 %v248_v29, %v716_v27  ;;  %v244_v38 = vsub.s32 %v241_v31, %v716_v27  ;;  %v276_v50 = vadd.s32 4294967240, %v229_v26  ;;  %vm281_vm8 = vcmask 523712  }
  0x14   : > { %184 = vadd.xlane.f32.xlu0 %v183_v6  ;;  %190 = vadd.xlane.f32.xlu1 %v189_v7  ;;  %v258_v45 = vsub.s32 %v255_v33, %v716_v27  ;;  %v265_v53 = vsub.s32 %v262_v42, %v716_v27  ;;  %v272_v61 = vsub.s32 %v269_v46, %v716_v27  ;;  %vm283_vm9 = vcmask 523264  }
  0x15   : > { %583 = vmatpush3.msra.mxu0 %v216_v20  ;;  %v279_v62 = vsub.s32 %v276_v50, %v716_v27  ;;  %vm362_vm10 = vcmask 1043456   ;;  %vm358_vm11 = vcmask 31744   ;;  %v444_v28 = vsub.s32 0, %v716_v27 }
  0x16   : > { %584 = vmatprep.subr.mxu0 %v622_v17  ;;  %596 = vmatpush3.msk.msra.mxu1 %vm362_vm10, %v357_v18 }
  0x17   : > { %585 = vmatpush3.msra.mxu0 %v215_v21 }
  0x18   : > { %193 = vadd.xlane.f32.xlu0 %v192_v10  ;;  %196 = vadd.xlane.f32.xlu1 %v195_v11 }
  0x19   : > { %586 = vmatprep.subr.mxu0 %v622_v17 }
  0x1a   : > { %587 = vmatpush3.msra.mxu0 %v214_v22 }
  0x1b   : > { %588 = vmatprep.subr.mxu0 %v622_v17 }
  0x1c   : > { %199 = vadd.xlane.f32.xlu0 %v198_v14  ;;  %202 = vadd.xlane.f32.xlu1 %v201_v15 }
  0x1d   : > { %589 = vmatpush3.msra.mxu0 %v213_v23 }
  0x1e   : > { %590 = vmatprep.subr.mxu0 %v622_v17 }
  0x1f   : > { %591 = vmatpush3.msra.mxu0 %v212_v24 }
  0x99   : > { %v182_v30 = vpop.xlane.xlu0 %181  ;;  %v188_v32 = vpop.xlane.xlu1 %187 }
  0x9a   : > { %v204_v35 = vmul.f32 0.020408163, %v182_v30  ;;  %v206_v39 = vmul.f32 0.020408163, %v188_v32 }
  0x9c   : > { %v233_v47 = vrot.slane %v204_v35, %v232_v34  ;;  %v245_v51 = vrot.slane %v206_v39, %v244_v38 }
  0x9d   : > { %v185_v40 = vpop.xlane.xlu0 %184  ;;  %v191_v41 = vpop.xlane.xlu1 %190 }
  0x9e   : > { %v205_v43 = vmul.f32 0.020408163, %v185_v40  ;;  %v207_v44 = vmul.f32 0.020408163, %v191_v41 }
  0xa0   : > { %v238_v48 = vrot.slane %v205_v43, %v237_v36  ;;  %v252_v49 = vrot.slane %v207_v44, %v251_v37 }
  0xa1   : > { %v194_v52 = vpop.xlane.xlu0 %193  ;;  %v197_v54 = vpop.xlane.xlu1 %196 }
  0xa2   : > { %v240_v55 = vsel %vm239_vm2, %v238_v48, %v233_v47  ;;  %v208_v56 = vmul.f32 0.020408163, %v194_v52  ;;  %v209_v57 = vmul.f32 0.020408163, %v197_v54 }
  0xa3   : > { %v247_v58 = vsel %vm246_vm3, %v245_v51, %v240_v55 }
  0xa4   : > { %v254_v59 = vsel %vm253_vm4, %v252_v49, %v247_v58  ;;  %v259_v60 = vrot.slane %v208_v56, %v258_v45  ;;  %v266_v63 = vrot.slane %v209_v57, %v265_v53 }
  0xa5   : > { %v200_v3 = vpop.xlane.xlu0 %199  ;;  %v203_v4 = vpop.xlane.xlu1 %202 }
  0xa6   : > { %v261_v6 = vsel %vm260_vm5, %v259_v60, %v254_v59  ;;  %v210_v7 = vmul.f32 0.020408163, %v200_v3  ;;  %v211_v10 = vmul.f32 0.020408163, %v203_v4 }
  0xa7   : > { %v268_v15 = vsel %vm267_vm6, %v266_v63, %v261_v6 }
  0xa8   : > { %v273_v11 = vrot.slane %v210_v7, %v272_v61  ;;  %v280_v14 = vrot.slane %v211_v10, %v279_v62 }
  0xaa   : > { %v275_v16 = vsel %vm274_vm7, %v273_v11, %v268_v15 }
  0xab   : > { %v282_v17 = vsel %vm281_vm8, %v280_v14, %v275_v16 }
  0xac   : > { %593 = vmatmul.mubr.msk.f32.vlgmr.msra.gmra.mxu0 %vm283_vm9, %v282_v17 }
 0x16c   : > { %v352_v19 = vpop.f32.mrf.mxu0 }
 0x16d   : > { %v356_v20 = vmax.f32 %v352_v19, 0.0 }
 0x16e   : > { %v594_v21 = vpop.f32.mrf.mxu0 }
 0x16f   : > { %598 = vmatmul.mubr.msk.f32.vlgmr.msra.gmra.mxu1 %vm358_vm11, %v356_v20 }
 0x22f   : > { %v432_v22 = vpop.f32.mrf.mxu1 }
 0x230   : > { %v560_v23 = vmul.f32 -1.442695, %v432_v22 }
 0x231   : > { %v599_v24 = vpop.f32.mrf.mxu1 }
 0x232   : > { %610 = vpow2.f32 %v560_v23 }
 0x23f   : > { %v611_v25 = vpop.eup %610 }
 0x240   : > { %v439_v26 = vadd.f32 1.0, %v611_v25 }
 0x242   : > { %612 = vrcp.f32 %v439_v26 }
 0x24f   : > { %v613_v29 = vpop.eup %612 }
 0x250   : > { %v445_v30 = vrot.slane %v613_v29, %v444_v28 }
 0x252   : > { %451 = vbcast.lane.b32.xlu1 %v445_v30, 264  ;;  %447 = vbcast.lane.b32.xlu0 %v445_v30, 256 }
 0x256   : > { %455 = vbcast.lane.b32.xlu1 %v445_v30, 272  ;;  %463 = vbcast.lane.b32.xlu0 %v445_v30, 288 }
 0x25a   : > { %459 = vbcast.lane.b32.xlu1 %v445_v30, 280  ;;  %471 = vbcast.lane.b32.xlu0 %v445_v30, 304 }
 0x25e   : > { %467 = vbcast.lane.b32.xlu1 %v445_v30, 296 }
 0x262   : > { %475 = vbcast.lane.b32.xlu1 %v445_v30, 312 }
 0x2c4   : > { %v452_v31 = vpop.permute.xlu1 %451  ;;  %v448_v32 = vpop.permute.xlu0 %447 }
 0x2c5   : > { %v478_v33 = vmul.f32 %v452_v31, %v664_v2  ;;  %v477_v27 = vmul.f32 %v448_v32, %v660_v0 }
 0x2c7   : > { %486 = vst.msk [vmem:[%s170_s11 + $0x8] sm:$0xff] %vm179_vm0, %v478_v33  ;;  %485 = vst.msk [vmem:[%s170_s11] sm:$0xff] %vm179_vm0, %v477_v27 }
 0x2c8   : > { %v456_v34 = vpop.permute.xlu1 %455  ;;  %v464_v35 = vpop.permute.xlu0 %463 }
 0x2c9   : > { %v479_v36 = vmul.f32 %v456_v34, %v662_v1  ;;  %v481_v37 = vmul.f32 %v464_v35, %v676_v8 }
 0x2cb   : > { %487 = vst.msk [vmem:[%s170_s11 + $0x10] sm:$0xff] %vm179_vm0, %v479_v36  ;;  %489 = vst.msk [vmem:[%s170_s11 + $0x20] sm:$0xff] %vm179_vm0, %v481_v37 }
 0x2cc   : > { %v460_v38 = vpop.permute.xlu1 %459  ;;  %v472_v39 = vpop.permute.xlu0 %471 }
 0x2cd   : > { %v480_v2 = vmul.f32 %v460_v38, %v670_v5  ;;  %v483_v0 = vmul.f32 %v472_v39, %v684_v12 }
 0x2cf   : > { %488 = vst.msk [vmem:[%s170_s11 + $0x18] sm:$0xff] %vm179_vm0, %v480_v2  ;;  %491 = vst.msk [vmem:[%s170_s11 + $0x30] sm:$0xff] %vm179_vm0, %v483_v0 }
 0x2d0   : > { %v468_v40 = vpop.permute.xlu1 %467 }
 0x2d1   : > { %v482_v41 = vmul.f32 %v468_v40, %v678_v9 }
 0x2d3   : > { %490 = vst.msk [vmem:[%s170_s11 + $0x28] sm:$0xff] %vm179_vm0, %v482_v41 }
 0x2d4   : > { %v476_v1 = vpop.permute.xlu1 %475 }
 0x2d5   : > { %v484_v8 = vmul.f32 %v476_v1, %v686_v13 }
 0x2d7   : > { %492 = vst.msk [vmem:[%s170_s11 + $0x38] sm:$0xff] %vm179_vm0, %v484_v8 }
 0x2d8 PF: > { %s13_s12 = sadd.s32 1, %s620_s12  }
 0x2d9   : > { %p10_p4 = scmp.ge.s32.totalorder %s13_s12, 4  }
 0x2db   :  { %12 = sbr.rel (!%p10_p4) target bundleno = 1 (0x1), region = 62 }

</bundles_post_ra>
